<compile_context>
chip_gen: v6e
topology: v6e:2x2x1
jax: 0.10.0
libtpu: 0.0.40
codegen_flags: <defaults>
</compile_context>

<pallas_src>
import math
from functools import lru_cache

import numpy as np
import jax
import jax.numpy as jnp
from jax.experimental import pallas as pl
from jax.experimental.pallas import tpu as pltpu

LN_EPS = 1e-5                      # torch.nn.LayerNorm default eps
_INV_SQRT2 = 0.7071067811865476


def _vmem():
    return pl.BlockSpec(memory_space=pltpu.MemorySpace.VMEM)


# ------------------------------------------------------------------------------------------------
# DFT basis matrices.
#   rfft2(y, norm='ortho') over an (a, b) grid, keeping wf = b//2+1 frequencies of the last axis,
#   is the linear map  Y = D @ y_flat  with complex D of shape (a*wf, a*b).
#   irfft2(Z, s=(a,b), norm='ortho') of an ARBITRARY complex half-spectrum Z is  y = Re(E @ Z_flat),
#   where the Hermitian-mirrored columns contribute a factor c_k2 in {1, 2}.
# Both are block-diagonalised over the batch so the whole batch is one matmul each way.
# ------------------------------------------------------------------------------------------------
@lru_cache(maxsize=None)
def _dft_mats(batch, a, b):
    wf = b // 2 + 1
    k1, k2 = np.meshgrid(np.arange(a), np.arange(wf), indexing="ij")      # (a, wf)
    n1, n2 = np.meshgrid(np.arange(a), np.arange(b), indexing="ij")       # (a, b)
    kf1 = k1.reshape(-1, 1).astype(np.float64)
    kf2 = k2.reshape(-1, 1).astype(np.float64)
    nf1 = n1.reshape(1, -1).astype(np.float64)
    nf2 = n2.reshape(1, -1).astype(np.float64)
    phase = 2.0 * np.pi * (kf1 * nf1 / a + kf2 * nf2 / b)                 # (a*wf, a*b)
    scale = 1.0 / np.sqrt(a * b)
    fwd = np.exp(-1j * phase) * scale                                      # rfft2 map
    c = np.where((k2 == 0) | ((b % 2 == 0) & (k2 == b // 2)), 1.0, 2.0).reshape(-1, 1)
    inv = (np.exp(+1j * phase) * scale * c).T                              # (a*b, a*wf) irfft2 map
    eye = np.eye(batch)
    return (np.kron(eye, fwd.real).astype(np.float32),
            np.kron(eye, fwd.imag).astype(np.float32),
            np.kron(eye, inv.real).astype(np.float32),
            np.kron(eye, inv.imag).astype(np.float32))


def _ln_rows(v, g, b):
    mu = jnp.mean(v, axis=-1, keepdims=True)
    vc = v - mu
    var = jnp.mean(vc * vc, axis=-1, keepdims=True)
    return vc * jax.lax.rsqrt(var + LN_EPS) * g + b


# ------------------------------------------------------------------------------------------------
# Fused block kernel: LN1 -> DFT -> complex filter -> inverse DFT -> LN2 -> MLP -> +residual
# ------------------------------------------------------------------------------------------------
def _fs_block_kernel(x_ref, dr_ref, di_ref, er_ref, ei_ref, wr_ref, wi_ref,
                     g1_ref, b1_ref, g2_ref, b2_ref,
                     w1_ref, fb1_ref, w2_ref, fb2_ref, o_ref):
    x = x_ref[...]                                                  # (B*N, C)
    # ---- norm1 (VPU row reduction) ----
    y = _ln_rows(x, g1_ref[...], b1_ref[...])
    # ---- FrequencySplitFilter: irfft2(rfft2(y) * W_eff) as real MXU matmuls ----
    yr = jnp.dot(dr_ref[...], y, preferred_element_type=jnp.float32)   # (B*M, C)
    yi = jnp.dot(di_ref[...], y, preferred_element_type=jnp.float32)
    wr = wr_ref[...]
    wi = wi_ref[...]
    zr = yr * wr - yi * wi                                          # complex multiply, lane = C
    zi = yr * wi + yi * wr
    yf = (jnp.dot(er_ref[...], zr, preferred_element_type=jnp.float32)
          - jnp.dot(ei_ref[...], zi, preferred_element_type=jnp.float32))  # (B*N, C) real
    # ---- norm2 + Mlp(fc1 -> exact GELU -> fc2) + residual ----
    yn = _ln_rows(yf, g2_ref[...], b2_ref[...])
    h = jnp.dot(yn, w1_ref[...], preferred_element_type=jnp.float32) + fb1_ref[...]
    h = 0.5 * h * (1.0 + jax.lax.erf(h * _INV_SQRT2))               # == torch.nn.GELU()
    mlp = jnp.dot(h, w2_ref[...], preferred_element_type=jnp.float32) + fb2_ref[...]
    o_ref[...] = x + mlp


def frequency_split_block(params, x):
    """x: (B, N, C) float32 tokens -> (B, N, C). Whole block = one pallas_call."""
    B, N, C = x.shape
    a = b = int(math.sqrt(N))                  # spatial grid, as in the PyTorch module
    wf = b // 2 + 1
    dr, di, er, ei = _dft_mats(B, a, b)        # numpy constants, baked at trace time
    # pre-blend the low/high complex weights (exact: the blend is linear in the weights)
    beta = params["beta"]
    w_eff = beta * params["low_w"] + (1.0 - beta) * params["high_w"]   # (a, wf, C, 2)
    wr = jnp.tile(w_eff[..., 0].reshape(a * wf, C), (B, 1))            # (B*M, C), ~3 KB
    wi = jnp.tile(w_eff[..., 1].reshape(a * wf, C), (B, 1))
    out = pl.pallas_call(
        _fs_block_kernel,
        out_shape=jax.ShapeDtypeStruct((B * N, C), jnp.float32),
        in_specs=[_vmem()] * 15,
        out_specs=_vmem(),
    )(x.reshape(B * N, C), dr, di, er, ei, wr, wi,
      params["ln1_g"], params["ln1_b"], params["ln2_g"], params["ln2_b"],
      params["fc1_w"], params["fc1_b"], params["fc2_w"], params["fc2_b"])
    return out.reshape(B, N, C)


# ------------------------------------------------------------------------------------------------
# Pure-jnp reference (mirrors the PyTorch module op-for-op, using XLA rfft2/irfft2) for validation.
# ------------------------------------------------------------------------------------------------
def reference_block(params, x):
    B, N, C = x.shape
    a = b = int(math.sqrt(N))
    hi = jax.lax.Precision.HIGHEST
    beta = params["beta"]
    y = _ln_rows(x, params["ln1_g"], params["ln1_b"])
    y4 = y.reshape(B, a, b, C).transpose(0, 3, 1, 2)                   # (B, C, a, b)
    yf = jnp.fft.rfft2(y4, norm="ortho")                               # (B, C, a, wf)
    low = (params["low_w"][..., 0] + 1j * params["low_w"][..., 1]).transpose(2, 0, 1)
    high = (params["high_w"][..., 0] + 1j * params["high_w"][..., 1]).transpose(2, 0, 1)
    comb = beta * (yf * low) + (1.0 - beta) * (yf * high)
    yflt = jnp.fft.irfft2(comb, s=(a, b), norm="ortho")                # (B, C, a, b)
    yflt = yflt.transpose(0, 2, 3, 1).reshape(B, N, C)
    yn = _ln_rows(yflt, params["ln2_g"], params["ln2_b"])
    h = jnp.dot(yn, params["fc1_w"], precision=hi) + params["fc1_b"]
    h = 0.5 * h * (1.0 + jax.lax.erf(h * _INV_SQRT2))
    mlp = jnp.dot(h, params["fc2_w"], precision=hi) + params["fc2_b"]
    return x + mlp


def init_params(key, dim, hidden, h, w):
    k_low, k_high, k_fc1, k_fc2 = jax.random.split(key, 4)
    std = 0.02
    return {
        "ln1_g": jnp.ones((1, dim), jnp.float32),
        "ln1_b": jnp.zeros((1, dim), jnp.float32),
        "low_w": jax.random.normal(k_low, (h, w, dim, 2), jnp.float32) * std,
        "high_w": jax.random.normal(k_high, (h, w, dim, 2), jnp.float32) * std,
        "beta": jnp.array(0.5, jnp.float32),
        "ln2_g": jnp.ones((1, dim), jnp.float32),
        "ln2_b": jnp.zeros((1, dim), jnp.float32),
        "fc1_w": jax.random.normal(k_fc1, (dim, hidden), jnp.float32) * std,
        "fc1_b": jnp.zeros((1, hidden), jnp.float32),
        "fc2_w": jax.random.normal(k_fc2, (hidden, dim), jnp.float32) * std,
        "fc2_b": jnp.zeros((1, dim), jnp.float32),
    }


if __name__ == "__main__":
    B = 2
    DIM = 32                      # embed dim C
    A = 4                         # spatial token grid a = b = 4  ->  N = 16 tokens
    N = A * A
    WF = A // 2 + 1               # rfft2 last-axis length == filter 'w'
    HIDDEN = int(DIM * 4.0)       # mlp_ratio = 4.0 -> 128 (lane-dense intermediate)

    key = jax.random.PRNGKey(0)
    pkey, xkey = jax.random.split(key)
    params = init_params(pkey, DIM, HIDDEN, A, WF)
    x = jax.random.normal(xkey, (B, N, DIM), jnp.float32)

    fwd = jax.jit(frequency_split_block)
    out = fwd(params, x)
    jax.block_until_ready(out)
    assert out.shape == (B, N, DIM)
    assert bool(jnp.all(jnp.isfinite(out)))

    # validate the fused DFT-matmul kernel against the straightforward jnp/XLA-FFT reference
    ref = jax.jit(reference_block)(params, x)
    jax.block_until_ready(ref)
    max_err = float(jnp.max(jnp.abs(out - ref)))
    assert np.allclose(np.asarray(out), np.asarray(ref), rtol=5e-3, atol=5e-3), max_err

    print("KERNEL_OK")
</pallas_src>

<mosaic_0001>
module attributes {stable_mosaic.version = 11 : i64} {
  func.func @_fs_block_kernel(%arg0: memref<32x32xf32, #tpu.memory_space<vmem>>, %arg1: memref<24x32xf32, #tpu.memory_space<vmem>>, %arg2: memref<24x32xf32, #tpu.memory_space<vmem>>, %arg3: memref<32x24xf32, #tpu.memory_space<vmem>>, %arg4: memref<32x24xf32, #tpu.memory_space<vmem>>, %arg5: memref<24x32xf32, #tpu.memory_space<vmem>>, %arg6: memref<24x32xf32, #tpu.memory_space<vmem>>, %arg7: memref<1x32xf32, #tpu.memory_space<vmem>>, %arg8: memref<1x32xf32, #tpu.memory_space<vmem>>, %arg9: memref<1x32xf32, #tpu.memory_space<vmem>>, %arg10: memref<1x32xf32, #tpu.memory_space<vmem>>, %arg11: memref<32x128xf32, #tpu.memory_space<vmem>>, %arg12: memref<1x128xf32, #tpu.memory_space<vmem>>, %arg13: memref<128x32xf32, #tpu.memory_space<vmem>>, %arg14: memref<1x32xf32, #tpu.memory_space<vmem>>, %arg15: memref<32x32xf32, #tpu.memory_space<vmem>>) attributes {dimension_semantics = [], scalar_prefetch = 0 : i64, scratch_operands = 0 : i64, tpu.core_type = #tpu.core_type<tc>} {
    %c0 = arith.constant 0 : index
    %c0_0 = arith.constant 0 : index
    %0 = vector.load %arg0[%c0, %c0_0] : memref<32x32xf32, #tpu.memory_space<vmem>>, vector<32x32xf32>
    %c0_1 = arith.constant 0 : index
    %c0_2 = arith.constant 0 : index
    %1 = vector.load %arg7[%c0_1, %c0_2] : memref<1x32xf32, #tpu.memory_space<vmem>>, vector<1x32xf32>
    %c0_3 = arith.constant 0 : index
    %c0_4 = arith.constant 0 : index
    %2 = vector.load %arg8[%c0_3, %c0_4] : memref<1x32xf32, #tpu.memory_space<vmem>>, vector<1x32xf32>
    %cst = arith.constant dense<0.000000e+00> : vector<32xf32>
    %3 = vector.multi_reduction <add>, %0, %cst [1] : vector<32x32xf32> to vector<32xf32>
    %4 = vector.shape_cast %3 : vector<32xf32> to vector<32x1xf32>
    %cst_5 = arith.constant 3.200000e+01 : f32
    %5 = vector.broadcast %cst_5 : f32 to vector<32x1xf32>
    %6 = arith.divf %4, %5 : vector<32x1xf32>
    %7 = vector.broadcast %6 : vector<32x1xf32> to vector<32x32xf32>
    %8 = arith.subf %0, %7 : vector<32x32xf32>
    %9 = arith.mulf %8, %8 : vector<32x32xf32>
    %cst_6 = arith.constant dense<0.000000e+00> : vector<32xf32>
    %10 = vector.multi_reduction <add>, %9, %cst_6 [1] : vector<32x32xf32> to vector<32xf32>
    %11 = vector.shape_cast %10 : vector<32xf32> to vector<32x1xf32>
    %cst_7 = arith.constant 3.200000e+01 : f32
    %12 = vector.broadcast %cst_7 : f32 to vector<32x1xf32>
    %13 = arith.divf %11, %12 : vector<32x1xf32>
    %cst_8 = arith.constant 9.99999974E-6 : f32
    %14 = vector.broadcast %cst_8 : f32 to vector<32x1xf32>
    %15 = arith.addf %13, %14 : vector<32x1xf32>
    %16 = math.rsqrt %15 : vector<32x1xf32>
    %17 = vector.broadcast %16 : vector<32x1xf32> to vector<32x32xf32>
    %18 = arith.mulf %8, %17 : vector<32x32xf32>
    %19 = vector.broadcast %1 : vector<1x32xf32> to vector<32x32xf32>
    %20 = arith.mulf %18, %19 : vector<32x32xf32>
    %21 = vector.broadcast %2 : vector<1x32xf32> to vector<32x32xf32>
    %22 = arith.addf %20, %21 : vector<32x32xf32>
    %c0_9 = arith.constant 0 : index
    %c0_10 = arith.constant 0 : index
    %23 = vector.load %arg1[%c0_9, %c0_10] : memref<24x32xf32, #tpu.memory_space<vmem>>, vector<24x32xf32>
    %cst_11 = arith.constant dense<0.000000e+00> : vector<24x32xf32>
    %24 = tpu.matmul %23, %22, %cst_11 {dimension_numbers = #tpu.dot_dimension_numbers<[1], [0], [0], [1], [0, 0, 1, 1], [], []>} : vector<24x32xf32>, vector<32x32xf32>, vector<24x32xf32> -> vector<24x32xf32>
    %c0_12 = arith.constant 0 : index
    %c0_13 = arith.constant 0 : index
    %25 = vector.load %arg2[%c0_12, %c0_13] : memref<24x32xf32, #tpu.memory_space<vmem>>, vector<24x32xf32>
    %cst_14 = arith.constant dense<0.000000e+00> : vector<24x32xf32>
    %26 = tpu.matmul %25, %22, %cst_14 {dimension_numbers = #tpu.dot_dimension_numbers<[1], [0], [0], [1], [0, 0, 1, 1], [], []>} : vector<24x32xf32>, vector<32x32xf32>, vector<24x32xf32> -> vector<24x32xf32>
    %c0_15 = arith.constant 0 : index
    %c0_16 = arith.constant 0 : index
    %27 = vector.load %arg5[%c0_15, %c0_16] : memref<24x32xf32, #tpu.memory_space<vmem>>, vector<24x32xf32>
    %c0_17 = arith.constant 0 : index
    %c0_18 = arith.constant 0 : index
    %28 = vector.load %arg6[%c0_17, %c0_18] : memref<24x32xf32, #tpu.memory_space<vmem>>, vector<24x32xf32>
    %29 = arith.mulf %24, %27 : vector<24x32xf32>
    %30 = arith.mulf %26, %28 : vector<24x32xf32>
    %31 = arith.subf %29, %30 : vector<24x32xf32>
    %32 = arith.mulf %24, %28 : vector<24x32xf32>
    %33 = arith.mulf %26, %27 : vector<24x32xf32>
    %34 = arith.addf %32, %33 : vector<24x32xf32>
    %c0_19 = arith.constant 0 : index
    %c0_20 = arith.constant 0 : index
    %35 = vector.load %arg3[%c0_19, %c0_20] : memref<32x24xf32, #tpu.memory_space<vmem>>, vector<32x24xf32>
    %cst_21 = arith.constant dense<0.000000e+00> : vector<32x32xf32>
    %36 = tpu.matmul %35, %31, %cst_21 {dimension_numbers = #tpu.dot_dimension_numbers<[1], [0], [0], [1], [0, 0, 1, 1], [], []>} : vector<32x24xf32>, vector<24x32xf32>, vector<32x32xf32> -> vector<32x32xf32>
    %c0_22 = arith.constant 0 : index
    %c0_23 = arith.constant 0 : index
    %37 = vector.load %arg4[%c0_22, %c0_23] : memref<32x24xf32, #tpu.memory_space<vmem>>, vector<32x24xf32>
    %cst_24 = arith.constant dense<0.000000e+00> : vector<32x32xf32>
    %38 = tpu.matmul %37, %34, %cst_24 {dimension_numbers = #tpu.dot_dimension_numbers<[1], [0], [0], [1], [0, 0, 1, 1], [], []>} : vector<32x24xf32>, vector<24x32xf32>, vector<32x32xf32> -> vector<32x32xf32>
    %39 = arith.subf %36, %38 : vector<32x32xf32>
    %c0_25 = arith.constant 0 : index
    %c0_26 = arith.constant 0 : index
    %40 = vector.load %arg9[%c0_25, %c0_26] : memref<1x32xf32, #tpu.memory_space<vmem>>, vector<1x32xf32>
    %c0_27 = arith.constant 0 : index
    %c0_28 = arith.constant 0 : index
    %41 = vector.load %arg10[%c0_27, %c0_28] : memref<1x32xf32, #tpu.memory_space<vmem>>, vector<1x32xf32>
    %cst_29 = arith.constant dense<0.000000e+00> : vector<32xf32>
    %42 = vector.multi_reduction <add>, %39, %cst_29 [1] : vector<32x32xf32> to vector<32xf32>
    %43 = vector.shape_cast %42 : vector<32xf32> to vector<32x1xf32>
    %cst_30 = arith.constant 3.200000e+01 : f32
    %44 = vector.broadcast %cst_30 : f32 to vector<32x1xf32>
    %45 = arith.divf %43, %44 : vector<32x1xf32>
    %46 = vector.broadcast %45 : vector<32x1xf32> to vector<32x32xf32>
    %47 = arith.subf %39, %46 : vector<32x32xf32>
    %48 = arith.mulf %47, %47 : vector<32x32xf32>
    %cst_31 = arith.constant dense<0.000000e+00> : vector<32xf32>
    %49 = vector.multi_reduction <add>, %48, %cst_31 [1] : vector<32x32xf32> to vector<32xf32>
    %50 = vector.shape_cast %49 : vector<32xf32> to vector<32x1xf32>
    %cst_32 = arith.constant 3.200000e+01 : f32
    %51 = vector.broadcast %cst_32 : f32 to vector<32x1xf32>
    %52 = arith.divf %50, %51 : vector<32x1xf32>
    %cst_33 = arith.constant 9.99999974E-6 : f32
    %53 = vector.broadcast %cst_33 : f32 to vector<32x1xf32>
    %54 = arith.addf %52, %53 : vector<32x1xf32>
    %55 = math.rsqrt %54 : vector<32x1xf32>
    %56 = vector.broadcast %55 : vector<32x1xf32> to vector<32x32xf32>
    %57 = arith.mulf %47, %56 : vector<32x32xf32>
    %58 = vector.broadcast %40 : vector<1x32xf32> to vector<32x32xf32>
    %59 = arith.mulf %57, %58 : vector<32x32xf32>
    %60 = vector.broadcast %41 : vector<1x32xf32> to vector<32x32xf32>
    %61 = arith.addf %59, %60 : vector<32x32xf32>
    %c0_34 = arith.constant 0 : index
    %c0_35 = arith.constant 0 : index
    %62 = vector.load %arg11[%c0_34, %c0_35] : memref<32x128xf32, #tpu.memory_space<vmem>>, vector<32x128xf32>
    %cst_36 = arith.constant dense<0.000000e+00> : vector<32x128xf32>
    %63 = tpu.matmul %61, %62, %cst_36 {dimension_numbers = #tpu.dot_dimension_numbers<[1], [0], [0], [1], [0, 0, 1, 1], [], []>} : vector<32x32xf32>, vector<32x128xf32>, vector<32x128xf32> -> vector<32x128xf32>
    %c0_37 = arith.constant 0 : index
    %c0_38 = arith.constant 0 : index
    %64 = vector.load %arg12[%c0_37, %c0_38] : memref<1x128xf32, #tpu.memory_space<vmem>>, vector<1x128xf32>
    %65 = vector.broadcast %64 : vector<1x128xf32> to vector<32x128xf32>
    %66 = arith.addf %63, %65 : vector<32x128xf32>
    %cst_39 = arith.constant 5.000000e-01 : f32
    %67 = vector.broadcast %cst_39 : f32 to vector<32x128xf32>
    %68 = arith.mulf %67, %66 : vector<32x128xf32>
    %cst_40 = arith.constant 0.707106769 : f32
    %69 = vector.broadcast %cst_40 : f32 to vector<32x128xf32>
    %70 = arith.mulf %66, %69 : vector<32x128xf32>
    %71 = math.erf %70 : vector<32x128xf32>
    %cst_41 = arith.constant 1.000000e+00 : f32
    %72 = vector.broadcast %cst_41 : f32 to vector<32x128xf32>
    %73 = arith.addf %72, %71 : vector<32x128xf32>
    %74 = arith.mulf %68, %73 : vector<32x128xf32>
    %c0_42 = arith.constant 0 : index
    %c0_43 = arith.constant 0 : index
    %75 = vector.load %arg13[%c0_42, %c0_43] : memref<128x32xf32, #tpu.memory_space<vmem>>, vector<128x32xf32>
    %cst_44 = arith.constant dense<0.000000e+00> : vector<32x32xf32>
    %76 = tpu.matmul %74, %75, %cst_44 {dimension_numbers = #tpu.dot_dimension_numbers<[1], [0], [0], [1], [0, 0, 1, 1], [], []>} : vector<32x128xf32>, vector<128x32xf32>, vector<32x32xf32> -> vector<32x32xf32>
    %c0_45 = arith.constant 0 : index
    %c0_46 = arith.constant 0 : index
    %77 = vector.load %arg14[%c0_45, %c0_46] : memref<1x32xf32, #tpu.memory_space<vmem>>, vector<1x32xf32>
    %78 = vector.broadcast %77 : vector<1x32xf32> to vector<32x32xf32>
    %79 = arith.addf %76, %78 : vector<32x32xf32>
    %80 = arith.addf %0, %79 : vector<32x32xf32>
    %c0_47 = arith.constant 0 : index
    %c0_48 = arith.constant 0 : index
    %81 = vector.load %arg15[%c0_47, %c0_48] : memref<32x32xf32, #tpu.memory_space<vmem>>, vector<32x32xf32>
    tpu.vector_store %arg15[%c0_47, %c0_48], %80 {strides = array<i32>} : memref<32x32xf32, #tpu.memory_space<vmem>>, vector<32x32xf32>,
    return
  }
}

</mosaic_0001>

<bundles_post_ra>
// kernel: tile.15
= control target key start
LH: loop header
LB: loop body
LE: loop exit
PB: predicated region body
PF: predicated region fallthrough
CT: control target
= control target key end

     0   :  { %vm3_vm0 = vcmask 261120   ;;  %s60_s0 = inlined_call_operand.vmem [shape: f32[2,12,32], index: 0, kind: input, shape index: {}]   ;;  %s61_s1 = inlined_call_operand.vmem [shape: f32[24,32], index: 1, kind: output, shape index: {}]  }
   0x1   :  { %v2_v0 = vld [vmem:[%s60_s0] sm:$0xff]   ;;  %v20_v1 = vld [vmem:[%s60_s0 + $0x8] sm:$0xf]   ;;  %v22_v2 = vld [vmem:[%s60_s0 + $0x10] sm:$0xff]  }
   0x2   :  { %4 = vst.msk [vmem:[%s61_s1] sm:$0xff] %vm3_vm0, %v2_v0   ;;  %21 = vst.msk [vmem:[%s61_s1 + $0x8] sm:$0xf] %vm3_vm0, %v20_v1   ;;  %v24_v3 = vld [vmem:[%s60_s0 + $0x18] sm:$0xf]  }
   0x3   :  { %23 = vst.msk [vmem:[%s61_s1 + $0xc] sm:$0xff] %vm3_vm0, %v22_v2   ;;  %25 = vst.msk [vmem:[%s61_s1 + $0x14] sm:$0xf] %vm3_vm0, %v24_v3  }

// kernel: frequency_split_block.1
= control target key start
LH: loop header
LB: loop body
LE: loop exit
PB: predicated region body
PF: predicated region fallthrough
CT: control target
= control target key end

     0   :  { %vm57_vm0 = vcmask 261120   ;;  %s1437_s0 = inlined_call_operand.vmem [shape: f32[32,32], index: 0, kind: input, shape index: {}]   ;;  %s1438_s1 = inlined_call_operand.vmem [shape: f32[24,32], index: 1, kind: input, shape index: {}]   ;;  %s1439_s2 = inlined_call_operand.vmem [shape: f32[24,32], index: 2, kind: input, shape index: {}]   ;;  %s1440_s3 = inlined_call_operand.vmem [shape: f32[32,24], index: 3, kind: input, shape index: {}]   ;;  %s1441_s4 = inlined_call_operand.vmem [shape: f32[32,24], index: 4, kind: input, shape index: {}]   ;;  %s1442_s5 = inlined_call_operand.vmem [shape: f32[24,32], index: 5, kind: input, shape index: {}]   ;;  %s1443_s6 = inlined_call_operand.vmem [shape: f32[24,32], index: 6, kind: input, shape index: {}]   ;;  %s1444_s7 = inlined_call_operand.vmem [shape: f32[1,32], index: 7, kind: input, shape index: {}]   ;;  %s1445_s8 = inlined_call_operand.vmem [shape: f32[1,32], index: 8, kind: input, shape index: {}]   ;;  %s1446_s9 = inlined_call_operand.vmem [shape: f32[1,32], index: 9, kind: input, shape index: {}]   ;;  %s1447_s10 = inlined_call_operand.vmem [shape: f32[1,32], index: 10, kind: input, shape index: {}]   ;;  %s1448_s11 = inlined_call_operand.vmem [shape: f32[32,128], index: 11, kind: input, shape index: {}]   ;;  %s1449_s12 = inlined_call_operand.vmem [shape: f32[1,128], index: 12, kind: input, shape index: {}]   ;;  %s1450_s13 = inlined_call_operand.vmem [shape: f32[128,32], index: 13, kind: input, shape index: {}]   ;;  %s1451_s14 = inlined_call_operand.vmem [shape: f32[1,32], index: 14, kind: input, shape index: {}]   ;;  %s1452_s15 = inlined_call_operand.hbm [shape: f32[32,32], index: 15, kind: output, shape index: {}]  }
   0x1   :  { %v1209_v0 = vld [vmem:[%s1437_s0 + $0x18] sm:$0xff]  ;;  %v1214_v1 = vld [vmem:[%s1437_s0 + $0x10] sm:$0xff]  ;;  %v1219_v2 = vld [vmem:[%s1437_s0 + $0x8] sm:$0xff] }
   0x2   :  { %v67_v3 = vsel %vm57_vm0, %v1209_v0, 0.0  ;;  %v61_v4 = vsel %vm57_vm0, %v1219_v2, 0.0  ;;  %v1228_v5 = vld [vmem:[%s1437_s0] sm:$0xff] }
   0x3   :  { %20 = vsyncpa [#allocation3], 0  ;;  %68 = vadd.xlane.f32.xlu0 %v67_v3  ;;  %62 = vadd.xlane.f32.xlu1 %v61_v4  ;;  %v64_v6 = vsel %vm57_vm0, %v1214_v1, 0.0  ;;  %v58_v7 = vsel %vm57_vm0, %v1228_v5, 0.0  ;;  %v1121_v28 = vmov 0.0   ;;  %vm1122_vm1 = vmmov 0  }
   0x4   :  { %960 = vmatprep.subr.mxu0 %v1121_v28  ;;  %968 = vmatprep.mubr.msk.f32.mxu0 %vm1122_vm1, %v1121_v28  ;;  %v880_v42 = vld [vmem:[%s1444_s7] ss:$0 sm:$0xff]  ;;  %v132_v60 = vld [vmem:[%s1438_s1 + $0x8] sm:$0xff]  ;;  %v133_v61 = vld [vmem:[%s1438_s1 + $0x10] sm:$0xff]  ;;  %vm343_vm2 = vcmask 195584  }
   0x5   :  { %v881_v44 = vld [vmem:[%s1445_s8] ss:$0 sm:$0xff]  ;;  %v224_v63 = vld [vmem:[%s1439_s2 + $0x8] sm:$0xff]  ;;  %v225_v3 = vld [vmem:[%s1439_s2 + $0x10] sm:$0xff] }
   0x6   :  { %v131_v59 = vld [vmem:[%s1438_s1] sm:$0xff] }
   0x7   :  { %65 = vadd.xlane.f32.xlu0 %v64_v6  ;;  %59 = vadd.xlane.f32.xlu1 %v58_v7  ;;  %v223_v62 = vld [vmem:[%s1439_s2] sm:$0xff] }
   0x8   :  { %v339_v4 = vld [vmem:[%s1440_s3] sm:$0xff] }
   0x9   :  { %v441_v6 = vld [vmem:[%s1441_s4] sm:$0xff] }
   0xa   :  { %1012 = vmatprep.mubr.msk.f32.mxu1 %vm343_vm2, %v441_v6 }
  0x8c   :  { %v69_v8 = vpop.xlane.xlu0 %68  ;;  %v63_v9 = vpop.xlane.xlu1 %62 }
  0x8d   :  { %v74_v10 = vmul.f32 0.03125, %v69_v8  ;;  %v72_v11 = vmul.f32 0.03125, %v63_v9 }
  0x8f   :  { %v78_v12 = vsub.f32 %v1209_v0, %v74_v10  ;;  %v76_v13 = vsub.f32 %v1219_v2, %v72_v11 }
  0x90   :  { %v66_v14 = vpop.xlane.xlu0 %65  ;;  %v60_v15 = vpop.xlane.xlu1 %59 }
  0x91   :  { %v73_v16 = vmul.f32 0.03125, %v66_v14  ;;  %v82_v17 = vmul.f32 %v78_v12, %v78_v12  ;;  %v71_v18 = vmul.f32 0.03125, %v60_v15  ;;  %v80_v19 = vmul.f32 %v76_v13, %v76_v13 }
  0x93   :  { %v77_v20 = vsub.f32 %v1214_v1, %v73_v16  ;;  %v92_v21 = vsel %vm57_vm0, %v82_v17, 0.0  ;;  %v75_v22 = vsub.f32 %v1228_v5, %v71_v18  ;;  %v86_v23 = vsel %vm57_vm0, %v80_v19, 0.0  ;;  %v317_v16 = vld [vmem:[%s1442_s5 + $0x10] sm:$0xff]  ;;  %v316_v19 = vld [vmem:[%s1442_s5 + $0x8] sm:$0xff] }
  0x94   :  { %93 = vadd.xlane.f32.xlu0 %v92_v21  ;;  %v320_v17 = vld [vmem:[%s1443_s6 + $0x10] sm:$0xff] }
  0x95   :  { %v81_v24 = vmul.f32 %v77_v20, %v77_v20  ;;  %v79_v25 = vmul.f32 %v75_v22, %v75_v22 }
  0x97   :  { %v89_v26 = vsel %vm57_vm0, %v81_v24, 0.0  ;;  %v83_v27 = vsel %vm57_vm0, %v79_v25, 0.0  ;;  %v315_v24 = vld [vmem:[%s1442_s5] sm:$0xff] }
  0x98   :  { %87 = vadd.xlane.f32.xlu0 %v86_v23  ;;  %90 = vadd.xlane.f32.xlu1 %v89_v26 }
  0x9c   :  { %84 = vadd.xlane.f32.xlu1 %v83_v27 }
 0x11d   :  { %v94_v29 = vpop.xlane.xlu0 %93 }
 0x11e   :  { %v98_v30 = vmul.f32 0.03125, %v94_v29  ;;  %v318_v29 = vld [vmem:[%s1443_s6] sm:$0xff] }
 0x120   :  { %v102_v31 = vadd.f32 1e-05, %v98_v30 }
 0x121   :  { %v88_v32 = vpop.xlane.xlu0 %87  ;;  %v91_v33 = vpop.xlane.xlu1 %90 }
 0x122   :  { %1075 = vrsqrt.f32 %v102_v31  ;;  %v96_v34 = vmul.f32 0.03125, %v88_v32  ;;  %v97_v35 = vmul.f32 0.03125, %v91_v33 }
 0x124   :  { %v100_v36 = vadd.f32 1e-05, %v96_v34  ;;  %v101_v37 = vadd.f32 1e-05, %v97_v35 }
 0x125   :  { %v85_v38 = vpop.xlane.xlu1 %84 }
 0x126   :  { %1077 = vrsqrt.f32 %v100_v36  ;;  %v95_v39 = vmul.f32 0.03125, %v85_v38 }
 0x127   :  { %1079 = vrsqrt.f32 %v101_v37 }
 0x128   :  { %v99_v40 = vadd.f32 1e-05, %v95_v39 }
 0x12a   :  { %1081 = vrsqrt.f32 %v99_v40 }
 0x12f   :  { %v1076_v41 = vpop.eup %1075 }
 0x130   :  { %v110_v43 = vmul.f32 %v1076_v41, %v78_v12 }
 0x132   :  { %v120_v45 = vmul.f32 %v880_v42, %v110_v43  ;;  %v340_v43 = vld [vmem:[%s1440_s3 + $0x8] sm:$0xff] }
 0x133   :  { %v1078_v46 = vpop.eup %1077 }
 0x134   :  { %v1080_v47 = vpop.eup %1079  ;;  %v130_v48 = vadd.f32 %v881_v44, %v120_v45  ;;  %v108_v49 = vmul.f32 %v1078_v46, %v76_v13  ;;  %v341_v45 = vld [vmem:[%s1440_s3 + $0x10] sm:$0xff] }
 0x135   :  { %v109_v50 = vmul.f32 %v1080_v47, %v77_v20  ;;  %v319_v20 = vld [vmem:[%s1443_s6 + $0x8] sm:$0xff]  ;;  %v443_v46 = vld [vmem:[%s1441_s4 + $0x10] sm:$0xff]  ;;  %v342_v47 = vld [vmem:[%s1440_s3 + $0x18] sm:$0xff] }
 0x136   :  { %961 = vmatpush3.msra.mxu0 %v130_v48  ;;  %v118_v53 = vmul.f32 %v880_v42, %v108_v49 }
 0x137   :  { %v1082_v51 = vpop.eup %1081  ;;  %962 = vmatprep.subr.mxu0 %v1121_v28  ;;  %v119_v52 = vmul.f32 %v880_v42, %v109_v50 }
 0x138   :  { %v107_v54 = vmul.f32 %v1082_v51, %v75_v22  ;;  %v128_v57 = vadd.f32 %v881_v44, %v118_v53 }
 0x139   :  { %v129_v55 = vadd.f32 %v881_v44, %v119_v52 }
 0x13a   :  { %v117_v56 = vmul.f32 %v880_v42, %v107_v54 }
 0x13b   :  { %963 = vmatpush3.msra.mxu0 %v129_v55 }
 0x13c   :  { %964 = vmatprep.subr.mxu0 %v1121_v28  ;;  %v127_v58 = vadd.f32 %v881_v44, %v117_v56  ;;  %v442_v44 = vld [vmem:[%s1441_s4 + $0x8] sm:$0xff] }
 0x13d   :  { %965 = vmatpush3.msra.mxu0 %v128_v57 }
 0x13e   :  { %966 = vmatprep.subr.mxu0 %v1121_v28 }
 0x13f   :  { %967 = vmatpush3.msra.mxu0 %v127_v58 }
 0x140   :  { %969 = vmatmul.mubr.msk.f32.vlgmr.msra.gmra.mxu0 %vm57_vm0, %v131_v59  ;;  %977 = vmatprep.subr.mxu0 %v1121_v28 }
 0x141   :  { %978 = vmatpush3.msra.mxu0 %v130_v48  ;;  %971 = vmatprep.mubr.msk.f32.mxu0 %vm1122_vm1, %v1121_v28  ;;  %v444_v48 = vld [vmem:[%s1441_s4 + $0x18] sm:$0xff] }
 0x142   :  { %979 = vmatprep.subr.mxu0 %v1121_v28 }
 0x143   :  { %980 = vmatpush3.msra.mxu0 %v129_v55 }
 0x144   :  { %972 = vmatmul.mubr.msk.f32.gmra.mxu0 %vm57_vm0, %v132_v60  ;;  %981 = vmatprep.subr.mxu0 %v1121_v28 }
 0x145   :  { %982 = vmatpush3.msra.mxu0 %v128_v57  ;;  %974 = vmatprep.mubr.msk.f32.mxu0 %vm1122_vm1, %v1121_v28 }
 0x146   :  { %983 = vmatprep.subr.mxu0 %v1121_v28 }
 0x147   :  { %984 = vmatpush3.msra.mxu0 %v127_v58 }
 0x148   :  { %975 = vmatmul.mubr.msk.f32.gmra.mxu0 %vm57_vm0, %v133_v61 }
 0x149   :  { %985 = vmatprep.mubr.msk.f32.mxu0 %vm1122_vm1, %v1121_v28 }
 0x14c   :  { %986 = vmatmul.mubr.msk.f32.vlgmr.msra.gmra.mxu0 %vm57_vm0, %v223_v62 }
 0x14d   :  { %988 = vmatprep.mubr.msk.f32.mxu0 %vm1122_vm1, %v1121_v28 }
 0x150   :  { %989 = vmatmul.mubr.msk.f32.gmra.mxu0 %vm57_vm0, %v224_v63 }
 0x151   :  { %991 = vmatprep.mubr.msk.f32.mxu0 %vm1122_vm1, %v1121_v28 }
 0x154   :  { %992 = vmatmul.mubr.msk.f32.gmra.mxu0 %vm57_vm0, %v225_v3 }
 0x155   :  { %1000 = vmatprep.mubr.msk.f32.mxu0 %vm343_vm2, %v339_v4 }
 0x200   :  { %v209_v7 = vpop.f32.mrf.mxu0 }
 0x201   :  { %v321_v37 = vmul.f32 %v315_v24, %v209_v7  ;;  %v330_v38 = vmul.f32 %v318_v29, %v209_v7 }
 0x202   :  { %v970_v8 = vpop.f32.mrf.mxu0 }
 0x204   :  { %v214_v9 = vpop.f32.mrf.mxu0 }
 0x205   :  { %v322_v30 = vmul.f32 %v316_v19, %v214_v9  ;;  %v331_v31 = vmul.f32 %v319_v20, %v214_v9 }
 0x206   :  { %v973_v10 = vpop.f32.mrf.mxu0 }
 0x208   :  { %v219_v11 = vpop.f32.mrf.mxu0 }
 0x209   :  { %v323_v21 = vmul.f32 %v317_v16, %v219_v11  ;;  %v332_v22 = vmul.f32 %v320_v17, %v219_v11 }
 0x20a   :  { %v976_v12 = vpop.f32.mrf.mxu0 }
 0x20c   :  { %v301_v13 = vpop.f32.mrf.mxu0 }
 0x20d   :  { %v324_v33 = vmul.f32 %v318_v29, %v301_v13  ;;  %v333_v34 = vmul.f32 %v315_v24, %v301_v13  ;;  %v763_v29 = vld [vmem:[%s1450_s13 + $0x78] sm:$0xff] }
 0x20e   :  { %v987_v14 = vpop.f32.mrf.mxu0 }
 0x20f   :  { %v327_v41 = vsub.f32 %v321_v37, %v324_v33  ;;  %v336_v42 = vadd.f32 %v333_v34, %v330_v38 }
 0x210   :  { %v306_v15 = vpop.f32.mrf.mxu0 }
 0x211   :  { %v325_v25 = vmul.f32 %v319_v20, %v306_v15  ;;  %v334_v26 = vmul.f32 %v316_v19, %v306_v15 }
 0x212   :  { %v990_v18 = vpop.f32.mrf.mxu0 }
 0x213   :  { %v328_v39 = vsub.f32 %v322_v30, %v325_v25  ;;  %v337_v40 = vadd.f32 %v334_v26, %v331_v31  ;;  %v623_v25 = vld [vmem:[%s1448_s11 + $0x18] sm:$0xff]  ;;  %v622_v26 = vld [vmem:[%s1448_s11 + $0x10] sm:$0xff]  ;;  %v761_v31 = vld [vmem:[%s1450_s13 + $0x68] sm:$0xff] }
 0x214   :  { %v311_v23 = vpop.f32.mrf.mxu0  ;;  %v762_v30 = vld [vmem:[%s1450_s13 + $0x70] sm:$0xff] }
 0x215   :  { %v326_v27 = vmul.f32 %v320_v17, %v311_v23  ;;  %v335_v28 = vmul.f32 %v317_v16, %v311_v23 }
 0x216   :  { %v993_v32 = vpop.f32.mrf.mxu0 }
 0x217   :  { %v329_v35 = vsub.f32 %v323_v21, %v326_v27  ;;  %v338_v36 = vadd.f32 %v335_v28, %v332_v22  ;;  %v621_v27 = vld [vmem:[%s1448_s11 + $0x8] sm:$0xff]  ;;  %v620_v28 = vld [vmem:[%s1448_s11] sm:$0xff] }
 0x219   :  { %994 = vmatprep.subr.mxu0 %v329_v35  ;;  %1006 = vmatprep.subr.mxu1 %v338_v36 }
 0x21a   :  { %995 = vmatpush3.msra.mxu0 %v329_v35  ;;  %1007 = vmatpush3.msra.mxu1 %v338_v36 }
 0x21b   :  { %996 = vmatprep.subr.mxu0 %v328_v39  ;;  %1008 = vmatprep.subr.mxu1 %v337_v40 }
 0x21c   :  { %997 = vmatpush3.msra.mxu0 %v328_v39  ;;  %1009 = vmatpush3.msra.mxu1 %v337_v40 }
 0x21d   :  { %998 = vmatprep.subr.mxu0 %v327_v41  ;;  %1010 = vmatprep.subr.mxu1 %v336_v42 }
 0x21e   :  { %999 = vmatpush3.msra.mxu0 %v327_v41  ;;  %1011 = vmatpush3.msra.mxu1 %v336_v42 }
 0x21f   :  { %1001 = vmatmul.mubr.msk.f32.vlgmr.msra.gmra.mxu0 %vm343_vm2, %v340_v43  ;;  %1013 = vmatmul.mubr.msk.f32.vlgmr.msra.gmra.mxu1 %vm343_vm2, %v442_v44 }
 0x220   :  { %1003 = vmatprep.mubr.msk.f32.mxu0 %vm343_vm2, %v341_v45  ;;  %1015 = vmatprep.mubr.msk.f32.mxu1 %vm343_vm2, %v443_v46  ;;  %v896_v46 = vld [vmem:[%s1446_s9] ss:$0 sm:$0xff] }
 0x221   :  { %1018 = vmatprep.subr.mxu0 %v623_v25  ;;  %1032 = vmatprep.subr.mxu1 %v763_v29 }
 0x222   :  { %1019 = vmatpush3.msra.mxu0 %v623_v25  ;;  %1033 = vmatpush3.msra.mxu1 %v763_v29 }
 0x223   :  { %1004 = vmatmul.mubr.msk.f32.gmra.mxu0 %vm343_vm2, %v342_v47  ;;  %1016 = vmatmul.mubr.msk.f32.gmra.mxu1 %vm343_vm2, %v444_v48 }
 0x224   :  { %1020 = vmatprep.subr.mxu0 %v622_v26  ;;  %1034 = vmatprep.subr.mxu1 %v762_v30 }
 0x225   :  { %1021 = vmatpush3.msra.mxu0 %v622_v26  ;;  %1035 = vmatpush3.msra.mxu1 %v762_v30 }
 0x226   :  { %1022 = vmatprep.subr.mxu0 %v621_v27  ;;  %1036 = vmatprep.subr.mxu1 %v761_v31 }
 0x227   :  { %1023 = vmatpush3.msra.mxu0 %v621_v27  ;;  %1037 = vmatpush3.msra.mxu1 %v761_v31 }
 0x228   :  { %1024 = vmatprep.subr.mxu0 %v620_v28 }
 0x229   :  { %1025 = vmatpush3.msra.mxu0 %v620_v28 }
 0x2df   :  { %v1002_v49 = vpop.f32.mrf.mxu0  ;;  %v1014_v50 = vpop.f32.mrf.mxu1 }
 0x2e0   :  { %v543_v51 = vsub.f32 %v1002_v49, %v1014_v50 }
 0x2e1   :  { %v422_v52 = vpop.f32.mrf.mxu0  ;;  %v523_v53 = vpop.f32.mrf.mxu1 }
 0x2e2   :  { %v542_v54 = vsub.f32 %v422_v52, %v523_v53  ;;  %v551_v55 = vsel %vm57_vm0, %v543_v51, 0.0 }
 0x2e3   :  { %v1017_v56 = vpop.f32.mrf.mxu1  ;;  %552 = vadd.xlane.f32.xlu1 %v551_v55  ;;  %v1005_v57 = vpop.f32.mrf.mxu0 }
 0x2e4   :  { %v545_v58 = vsub.f32 %v1005_v57, %v1017_v56  ;;  %v548_v59 = vsel %vm57_vm0, %v542_v54, 0.0 }
 0x2e5   :  { %v533_v60 = vpop.f32.mrf.mxu1  ;;  %549 = vadd.xlane.f32.xlu0 %v548_v59  ;;  %v432_v61 = vpop.f32.mrf.mxu0 }
 0x2e6   :  { %v544_v62 = vsub.f32 %v432_v61, %v533_v60  ;;  %v557_v63 = vsel %vm57_vm0, %v545_v58, 0.0 }
 0x2e7   :  { %558 = vadd.xlane.f32.xlu1 %v557_v63  ;;  %v759_v63 = vld [vmem:[%s1450_s13 + $0x58] sm:$0xff] }
 0x2e8   :  { %v554_v3 = vsel %vm57_vm0, %v544_v62, 0.0 }
 0x2e9   :  { %555 = vadd.xlane.f32.xlu0 %v554_v3  ;;  %v758_v3 = vld [vmem:[%s1450_s13 + $0x50] sm:$0xff] }
 0x36c   :  { %v553_v4 = vpop.xlane.xlu1 %552 }
 0x36d   :  { %v561_v6 = vmul.f32 0.03125, %v553_v4  ;;  %v757_v4 = vld [vmem:[%s1450_s13 + $0x48] sm:$0xff] }
 0x36e   :  { %v550_v7 = vpop.xlane.xlu0 %549 }
 0x36f   :  { %v565_v8 = vsub.f32 %v543_v51, %v561_v6  ;;  %v560_v9 = vmul.f32 0.03125, %v550_v7  ;;  %v897_v51 = vld [vmem:[%s1447_s10] ss:$0 sm:$0xff]  ;;  %v755_v7 = vld [vmem:[%s1450_s13 + $0x38] sm:$0xff]  ;;  %s1123_s10 = smov [#allocation2]  }
 0x370   :  { %v559_v10 = vpop.xlane.xlu1 %558  ;;  %v756_v6 = vld [vmem:[%s1450_s13 + $0x40] sm:$0xff]  ;;  %s869_s22 = sshll.u32 %s1123_s10, 4  ;;  %s870_s22 = int_to_ptr.vmem [resolvable:$true] %s869_s22 }
 0x371   :  { %v564_v11 = vsub.f32 %v542_v54, %v560_v9  ;;  %v563_v12 = vmul.f32 0.03125, %v559_v10  ;;  %v569_v13 = vmul.f32 %v565_v8, %v565_v8  ;;  %v753_v9 = vld [vmem:[%s1450_s13 + $0x28] sm:$0xff]  ;;  %v752_v10 = vld [vmem:[%s1450_s13 + $0x20] sm:$0xff]  ;;  %p1104_p1 = scmp.lt.s32.totalorder %s870_s22, %s870_s22 }
 0x372   :  { %v556_v14 = vpop.xlane.xlu0 %555 }
 0x373   :  { %v567_v15 = vsub.f32 %v545_v58, %v563_v12  ;;  %v562_v16 = vmul.f32 0.03125, %v556_v14  ;;  %v575_v17 = vsel %vm57_vm0, %v569_v13, 0.0  ;;  %v568_v18 = vmul.f32 %v564_v11, %v564_v11  ;;  %v750_v12 = vld [vmem:[%s1450_s13 + $0x10] sm:$0xff]  ;;  %v749_v13 = vld [vmem:[%s1450_s13 + $0x8] sm:$0xff]  ;;  %v748_v14 = vld [vmem:[%s1450_s13] sm:$0xff] }
 0x374   :  { %576 = vadd.xlane.f32.xlu1 %v575_v17 }
 0x375   :  { %v566_v19 = vsub.f32 %v544_v62, %v562_v16  ;;  %v572_v20 = vsel %vm57_vm0, %v568_v18, 0.0  ;;  %v571_v21 = vmul.f32 %v567_v15, %v567_v15  ;;  %v760_v62 = vld [vmem:[%s1450_s13 + $0x60] sm:$0xff] }
 0x376   :  { %573 = vadd.xlane.f32.xlu0 %v572_v20  ;;  %1038 = vmatprep.subr.mxu1 %v760_v62 }
 0x377   :  { %v581_v22 = vsel %vm57_vm0, %v571_v21, 0.0  ;;  %v570_v23 = vmul.f32 %v566_v19, %v566_v19  ;;  %1039 = vmatpush3.msra.mxu1 %v760_v62 }
 0x378   :  { %582 = vadd.xlane.f32.xlu1 %v581_v22  ;;  %1040 = vmatprep.subr.mxu1 %v759_v63 }
 0x379   :  { %v578_v24 = vsel %vm57_vm0, %v570_v23, 0.0  ;;  %1041 = vmatpush3.msra.mxu1 %v759_v63 }
 0x37a   :  { %579 = vadd.xlane.f32.xlu0 %v578_v24  ;;  %1042 = vmatprep.subr.mxu1 %v758_v3 }
 0x37b   :  { %1043 = vmatpush3.msra.mxu1 %v758_v3 }
 0x37c   :  { %1044 = vmatprep.subr.mxu1 %v757_v4 }
 0x37d   :  { %1045 = vmatpush3.msra.mxu1 %v757_v4 }
 0x37e   :  { %1046 = vmatprep.subr.mxu1 %v756_v6 }
 0x37f   :  { %1047 = vmatpush3.msra.mxu1 %v756_v6 }
 0x380   :  { %1048 = vmatprep.subr.mxu1 %v755_v7 }
 0x381   :  { %1049 = vmatpush3.msra.mxu1 %v755_v7 }
 0x3fd   :  { %v577_v32 = vpop.xlane.xlu1 %576 }
 0x3fe   :  { %v585_v33 = vmul.f32 0.03125, %v577_v32 }
 0x3ff   :  { %v574_v34 = vpop.xlane.xlu0 %573 }
 0x400   :  { %v589_v35 = vadd.f32 1e-05, %v585_v33  ;;  %v584_v36 = vmul.f32 0.03125, %v574_v34 }
 0x401   :  { %v583_v37 = vpop.xlane.xlu1 %582 }
 0x402   :  { %1083 = vrsqrt.f32 %v589_v35  ;;  %v588_v38 = vadd.f32 1e-05, %v584_v36  ;;  %v587_v39 = vmul.f32 0.03125, %v583_v37 }
 0x403   :  { %v580_v40 = vpop.xlane.xlu0 %579 }
 0x404   :  { %1085 = vrsqrt.f32 %v588_v38  ;;  %v591_v41 = vadd.f32 1e-05, %v587_v39  ;;  %v586_v42 = vmul.f32 0.03125, %v580_v40 }
 0x406   :  { %1087 = vrsqrt.f32 %v591_v41  ;;  %v590_v43 = vadd.f32 1e-05, %v586_v42 }
 0x408   :  { %1089 = vrsqrt.f32 %v590_v43 }
 0x40f   :  { %v1084_v44 = vpop.eup %1083 }
 0x410   :  { %v597_v45 = vmul.f32 %v1084_v44, %v565_v8  ;;  %v754_v8 = vld [vmem:[%s1450_s13 + $0x30] sm:$0xff]  ;;  %v903_v44 = vld [vmem:[%s1451_s14] ss:$0 sm:$0xff]  ;;  %s1099_s14 = scalar_lea.vmem %s870_s22, 512 }
 0x411   :  { %v1086_v47 = vpop.eup %1085  ;;  %1050 = vmatprep.subr.mxu1 %v754_v8  ;;  %p1100_p0 = scmp.ne.s32.totalorder %s870_s22, %s1099_s14  ;;  %p1105_p2 = scmp.lt.s32.totalorder %s1099_s14, %s1099_s14 }
 0x412   :  { %v596_v48 = vmul.f32 %v1086_v47, %v564_v11  ;;  %v607_v50 = vmul.f32 %v896_v46, %v597_v45  ;;  %1051 = vmatpush3.msra.mxu1 %v754_v8  ;;  %v751_v11 = vld [vmem:[%s1450_s13 + $0x18] sm:$0xff] }
 0x413   :  { %v1088_v49 = vpop.eup %1087  ;;  %1052 = vmatprep.subr.mxu1 %v753_v9  ;;  %p1106_p3 = por %p1105_p2, %p1104_p1 }
 0x414   :  { %v606_v52 = vmul.f32 %v896_v46, %v596_v48  ;;  %v599_v53 = vmul.f32 %v1088_v49, %v567_v15  ;;  %v617_v57 = vadd.f32 %v897_v51, %v607_v50  ;;  %1053 = vmatpush3.msra.mxu1 %v753_v9  ;;  %v898_v15 = vld [vmem:[%s1449_s12] ss:$0 sm:$0xff] }
 0x415   :  { %v1090_v54 = vpop.eup %1089  ;;  %1054 = vmatprep.subr.mxu1 %v752_v10  ;;  %p1107_p4 = pnand %p1106_p3, %p1100_p0 }
 0x416   :  { %v616_v55 = vadd.f32 %v897_v51, %v606_v52  ;;  %v598_v56 = vmul.f32 %v1090_v54, %v566_v19  ;;  %v609_v58 = vmul.f32 %v896_v46, %v599_v53  ;;  %1055 = vmatpush3.msra.mxu1 %v752_v10 }
 0x417   :  { %1056 = vmatprep.subr.mxu1 %v751_v11 }
 0x418   :  { %1026 = vmatprep.mubr.msk.f32.mxu0 %vm57_vm0, %v616_v55  ;;  %v608_v59 = vmul.f32 %v896_v46, %v598_v56  ;;  %v619_v61 = vadd.f32 %v897_v51, %v609_v58  ;;  %1057 = vmatpush3.msra.mxu1 %v751_v11 }
 0x419   :  { %1027 = vmatmul.mubr.msk.f32.vlgmr.msra.gmra.mxu0 %vm57_vm0, %v617_v57  ;;  %1058 = vmatprep.subr.mxu1 %v750_v12 }
 0x41a   :  { %v618_v60 = vadd.f32 %v897_v51, %v608_v59  ;;  %1059 = vmatpush3.msra.mxu1 %v750_v12 }
 0x41b   :  { %1060 = vmatprep.subr.mxu1 %v749_v13 }
 0x41c   :  { %1029 = vmatprep.mubr.msk.f32.mxu0 %vm57_vm0, %v618_v60  ;;  %1061 = vmatpush3.msra.mxu1 %v749_v13 }
 0x41d   :  { %1030 = vmatmul.mubr.msk.f32.gmra.mxu0 %vm57_vm0, %v619_v61  ;;  %1062 = vmatprep.subr.mxu1 %v748_v14 }
 0x41e   :  { %1063 = vmatpush3.msra.mxu1 %v748_v14 }
 0x4d9   :  { %v1028_v16 = vpop.f32.mrf.mxu0 }
 0x4da   :  { %v715_v17 = vadd.f32 %v1028_v16, %v898_v15 }
 0x4db   :  { %v709_v18 = vpop.f32.mrf.mxu0 }
 0x4dc   :  { %v733_v19 = vmul.f32 0.70710677, %v715_v17  ;;  %v710_v20 = vadd.f32 %v898_v15, %v709_v18  ;;  %v729_v34 = vmul.f32 0.5, %v715_v17 }
 0x4dd   :  { %v1031_v21 = vpop.f32.mrf.mxu0 }
 0x4de   :  { %1091 = verf.f32 %v733_v19  ;;  %v732_v22 = vmul.f32 0.70710677, %v710_v20  ;;  %v725_v23 = vadd.f32 %v1031_v21, %v898_v15  ;;  %v728_v31 = vmul.f32 0.5, %v710_v20 }
 0x4df   :  { %v719_v24 = vpop.f32.mrf.mxu0 }
 0x4e0   :  { %1093 = verf.f32 %v732_v22  ;;  %v735_v25 = vmul.f32 0.70710677, %v725_v23  ;;  %v720_v26 = vadd.f32 %v898_v15, %v719_v24  ;;  %v731_v41 = vmul.f32 0.5, %v725_v23 }
 0x4e2   :  { %1095 = verf.f32 %v735_v25  ;;  %v734_v27 = vmul.f32 0.70710677, %v720_v26  ;;  %v730_v39 = vmul.f32 0.5, %v720_v26 }
 0x4e4   :  { %1097 = verf.f32 %v734_v27 }
 0x4eb   :  { %v1092_v28 = vpop.eup %1091 }
 0x4ec   :  { %v741_v30 = vadd.f32 1.0, %v1092_v28 }
 0x4ed   :  { %v1094_v29 = vpop.eup %1093 }
 0x4ee   :  { %v740_v32 = vadd.f32 1.0, %v1094_v29  ;;  %v745_v37 = vmul.f32 %v741_v30, %v729_v34 }
 0x4ef   :  { %v1096_v33 = vpop.eup %1095 }
 0x4f0   :  { %v744_v35 = vmul.f32 %v740_v32, %v728_v31  ;;  %v743_v38 = vadd.f32 1.0, %v1096_v33 }
 0x4f1   :  { %v1098_v36 = vpop.eup %1097 }
 0x4f2   :  { %1064 = vmatprep.mubr.f32.mxu1 %v744_v35  ;;  %v742_v40 = vadd.f32 1.0, %v1098_v36  ;;  %v747_v43 = vmul.f32 %v743_v38, %v731_v41 }
 0x4f3   :  { %1065 = vmatmul.mubr.f32.vlgmr.msra.gmra.mxu1 %v745_v37 }
 0x4f4   :  { %v746_v42 = vmul.f32 %v742_v40, %v730_v39 }
 0x4f6   :  { %1067 = vmatprep.mubr.f32.mxu1 %v746_v42 }
 0x4f7   :  { %1068 = vmatmul.mubr.f32.gmra.mxu1 %v747_v43 }
 0x5b3   :  { %v1066_v45 = vpop.f32.mrf.mxu1 }
 0x5b4   :  { %v843_v46 = vadd.f32 %v1066_v45, %v903_v44 }
 0x5b5   :  { %v837_v47 = vpop.f32.mrf.mxu1 }
 0x5b6   :  { %v857_v48 = vadd.f32 %v843_v46, %v1219_v2  ;;  %v838_v49 = vadd.f32 %v903_v44, %v837_v47 }
 0x5b7   :  { %v1069_v50 = vpop.f32.mrf.mxu1 }
 0x5b8   :  { %861 = vst.msk [vmem:[#allocation2 + $0x8] sm:$0xff] %vm57_vm0, %v857_v48  ;;  %v856_v51 = vadd.f32 %v838_v49, %v1228_v5  ;;  %v853_v52 = vadd.f32 %v1069_v50, %v903_v44 }
 0x5b9   :  { %v847_v53 = vpop.f32.mrf.mxu1 }
 0x5ba   :  { %860 = vst.msk [vmem:[#allocation2] sm:$0xff] %vm57_vm0, %v856_v51  ;;  %v859_v54 = vadd.f32 %v853_v52, %v1209_v0  ;;  %v848_v55 = vadd.f32 %v903_v44, %v847_v53 }
 0x5bc   :  { %863 = vst.msk [vmem:[#allocation2 + $0x18] sm:$0xff] %vm57_vm0, %v859_v54  ;;  %v858_v2 = vadd.f32 %v848_v55, %v1214_v1 }
 0x5be   :  { %862 = vst.msk [vmem:[#allocation2 + $0x10] sm:$0xff] %vm57_vm0, %v858_v2 }
 0x5bf   :  { %1110 = shalt.err (!%p1107_p4)
}
 0x5c0   :  { %s1124_s23 = smov 128   ;;  %s1125_s24 = smov 8  }
 0x5c1   :  { %875 = dma.vmem_to_hbm [thread:$0]  %s870_s22, 512, %s1452_s15, [#allocation3], %s1124_s23, %s1124_s23, %s1125_s24  }
 0x5c2   :  { %1119 = dma.done.wait [#allocation3], 512  }
 0x5c3   :  { %1120 = vsyncadd [#allocation3], 4294966784 }
 0x5c4   :  { %879 = vsyncpa [#allocation3], 1 }

</bundles_post_ra>
